<compile_context>
chip_gen: v7x
topology: tpu7x:2x2x1
jax: 0.10.0
libtpu: 0.0.40
codegen_flags: <defaults>
</compile_context>

<pallas_src>
import jax
import jax.numpy as jnp
from jax.experimental import pallas as pl
from jax.experimental.pallas import tpu as pltpu

LANE = 128  # TPU lane width; D / H / E are padded to this for lane-dense tiles.


def _round_up(n, m):
    return ((n + m - 1) // m) * m


# ---------------------------------------------------------------------------
# Pallas kernel: relu(frames @ W1 + b1) -> per-item temporal mean -> @ W2 + b2
# ---------------------------------------------------------------------------
def _speaker_embed_kernel(x_ref, w1_ref, b1_ref, w2_ref, b2_ref, o_ref):
    # x_ref:  (Bt, T, Dp) bf16, lane-dense frames (D zero-padded to Dp)
    # w1_ref: (Dp, Hp) bf16     b1_ref: (1, Hp) f32
    # w2_ref: (Hp, Ep) bf16     b2_ref: (1, Ep) f32
    # o_ref:  (Bt, Ep) f32 (lane-dense output slab)
    bt, t, dp = x_ref.shape
    hp = w1_ref.shape[1]

    # One tall MXU matmul over every frame of the batch tile (bf16 in, f32 acc).
    # Reshape is layout-preserving (last dim unchanged, T is a multiple of 8).
    frames = x_ref[...].reshape(bt * t, dp)                               # (Bt*T, Dp)
    h = jnp.dot(frames, w1_ref[...], preferred_element_type=jnp.float32)  # (Bt*T, Hp)
    h = jnp.maximum(h + b1_ref[...], 0.0)                                 # f32 VPU epilogue

    # Temporal mean pool: sublane reduce on the XLU (overlaps with MXU work).
    pooled = jnp.mean(h.reshape(bt, t, hp), axis=1)                       # (Bt, Hp) f32

    emb = jnp.dot(pooled.astype(w2_ref.dtype), w2_ref[...],
                  preferred_element_type=jnp.float32)                     # (Bt, Ep)
    o_ref[...] = (emb + b2_ref[...]).astype(o_ref.dtype)


def speaker_embed_pallas(x_btdp, w1p, b1p, w2p, b2p, *, batch_tile=None):
    """x_btdp: [B, T, Dp] bf16 (lane-dense frames) -> padded embeddings [B, Ep] f32."""
    B, T, Dp = x_btdp.shape
    Hp = w1p.shape[1]
    Ep = w2p.shape[1]

    # batch_tile selection:
    #  * small B: whole batch in one step (amortizes ~0.35us/step overhead).
    #  * larger B: prefer >=2 grid steps so the "parallel" axis shards across
    #    v7x's two TensorCores, with batch_tile a multiple of 8 so all block
    #    shapes stay legal under the (8,128) rule, and Bt*T large enough to
    #    fill the 256-row MXU arrays on v6e/v7x.
    if batch_tile is None:
        batch_tile = B
        if B > 8:
            for cand in range(B // 2, 7, -1):
                if B % cand == 0 and cand % 8 == 0:
                    batch_tile = cand
                    break
    assert B % batch_tile == 0, "batch_tile must divide B"
    assert batch_tile == B or batch_tile % 8 == 0, \
        "batch_tile < B must be a multiple of 8 (sublane rule for the output block)"
    grid = (B // batch_tile,)

    # TODO(synk): for real SpeakerNet T (hundreds of frames), add a trailing
    # "arbitrary" T grid axis with a (Bt, Hp) f32 VMEM scratch accumulator
    # (pl.when init at t==0 / finalize at t==last) so the per-step x tile stays
    # bounded under v7x's 64 MiB VMEM.

    # Explicit VMEM budget: double-buffered x/out tiles + resident weights + h.
    vmem_bytes = (2 * batch_tile * T * Dp * 2        # bf16 x tile, double-buffered
                  + 2 * batch_tile * Ep * 4          # f32 out tile, double-buffered
                  + (Dp * Hp + Hp * Ep) * 2          # resident bf16 weights
                  + (Hp + Ep) * 4                    # biases
                  + batch_tile * T * Hp * 4)         # f32 hidden intermediate
    vmem_limit = min(128 * 1024 * 1024, max(32 * 1024 * 1024, 4 * vmem_bytes))

    flops = 2 * B * T * Dp * Hp + 2 * B * Hp * Ep
    bytes_accessed = (x_btdp.size * x_btdp.dtype.itemsize      # x streamed once
                      + w1p.size * 2 + w2p.size * 2            # bf16 weights, fetched once
                      + b1p.size * 4 + b2p.size * 4
                      + B * Ep * 4)                            # f32 output

    return pl.pallas_call(
        _speaker_embed_kernel,
        out_shape=jax.ShapeDtypeStruct((B, Ep), jnp.float32),
        grid_spec=pl.GridSpec(
            grid=grid,
            in_specs=[
                pl.BlockSpec((batch_tile, T, Dp), lambda i: (i, 0, 0)),  # x tile
                pl.BlockSpec((Dp, Hp), lambda i: (0, 0)),                # W1 resident
                pl.BlockSpec((1, Hp), lambda i: (0, 0)),                 # b1
                pl.BlockSpec((Hp, Ep), lambda i: (0, 0)),                # W2 resident
                pl.BlockSpec((1, Ep), lambda i: (0, 0)),                 # b2
            ],
            out_specs=pl.BlockSpec((batch_tile, Ep), lambda i: (i, 0)),
        ),
        compiler_params=pltpu.CompilerParams(
            dimension_semantics=("parallel",),
            vmem_limit_bytes=vmem_limit),
        cost_estimate=pl.CostEstimate(flops=flops, transcendentals=0,
                                      bytes_accessed=bytes_accessed),
    )(x_btdp, w1p, b1p, w2p, b2p)


# ---------------------------------------------------------------------------
# Inner "speaker model" (the thing WrappedModel wraps) and the wrapper itself.
# ---------------------------------------------------------------------------
def _pad_to(a, shape):
    return jnp.pad(a, [(0, s - d) for d, s in zip(a.shape, shape)])


class InnerSpeakerModel:
    """Small deterministic SpeakerNet-style embedding model (bf16 matmuls, f32 acc)."""

    def __init__(self, key, d_in=32, d_hidden=64, d_emb=48):
        k1, k2, k3, k4 = jax.random.split(key, 4)
        self.d_in, self.d_emb = d_in, d_emb
        # Logical parameters (f32 masters, used by the pure-JAX reference).
        self.w1 = jax.random.normal(k1, (d_in, d_hidden), jnp.float32) * 0.05
        self.b1 = jax.random.normal(k2, (1, d_hidden), jnp.float32) * 0.01
        self.w2 = jax.random.normal(k3, (d_hidden, d_emb), jnp.float32) * 0.05
        self.b2 = jax.random.normal(k4, (1, d_emb), jnp.float32) * 0.01
        # Lane-dense (padded-to-128), bf16 copies for the kernel, built once at init.
        self.dp = _round_up(d_in, LANE)
        hp = _round_up(d_hidden, LANE)
        ep = _round_up(d_emb, LANE)
        self.w1p = _pad_to(self.w1, (self.dp, hp)).astype(jnp.bfloat16)
        self.b1p = _pad_to(self.b1, (1, hp))                       # f32 (VPU epilogue)
        self.w2p = _pad_to(self.w2, (hp, ep)).astype(jnp.bfloat16)
        self.b2p = _pad_to(self.b2, (1, ep))                       # f32

    def __call__(self, x, label=None):
        # x arrives as [B, D, T] (PyTorch NCW).  One-time upstream layout transform:
        # frames-as-rows [B, T, Dp] bf16 with D zero-padded to the lane width, so the
        # kernel's x loads are unmasked and no in-kernel layout fix is needed.
        B, D, T = x.shape
        x_btd = jnp.transpose(x, (0, 2, 1)).astype(jnp.bfloat16)
        x_btdp = jnp.pad(x_btd, ((0, 0), (0, 0), (0, self.dp - D)))
        emb_pad = speaker_embed_pallas(x_btdp, self.w1p, self.b1p, self.w2p, self.b2p)
        emb = emb_pad[:, :self.d_emb]
        if label is None:
            return emb
        # TODO(synk): training-mode loss head (e.g. AAM-softmax) belongs to the
        # wrapped loss module, not WrappedModel; embeddings returned unchanged.
        return emb


class WrappedModel:
    """Exact semantics of the PyTorch WrappedModel: pure delegation."""

    def __init__(self, model):
        self.module = model

    def __call__(self, x, label=None):
        return self.module(x, label)


# ---------------------------------------------------------------------------
def _reference(x, m):
    """Pure-JAX reference with the same bf16-input / f32-accumulation math."""
    x_btd = jnp.transpose(x, (0, 2, 1)).astype(jnp.bfloat16)
    h = jnp.einsum("btd,dh->bth", x_btd, m.w1.astype(jnp.bfloat16),
                   preferred_element_type=jnp.float32)
    h = jnp.maximum(h + m.b1, 0.0)
    pooled = jnp.mean(h, axis=1)
    emb = jnp.dot(pooled.astype(jnp.bfloat16), m.w2.astype(jnp.bfloat16),
                  preferred_element_type=jnp.float32) + m.b2
    return emb


if __name__ == "__main__":
    key = jax.random.PRNGKey(0)
    k_x, k_m = jax.random.split(key)

    B, D, T = 2, 32, 16                       # small shapes: [B, D, T] (NCW)
    x = jax.random.normal(k_x, (B, D, T), jnp.float32)

    inner = InnerSpeakerModel(k_m, d_in=D, d_hidden=64, d_emb=48)
    model = WrappedModel(inner)

    out = model(x, label=None)                # forward(x, label=None)
    out = jax.block_until_ready(out)

    ref = jax.block_until_ready(_reference(x, inner))
    assert out.shape == (B, 48)
    assert jnp.max(jnp.abs(out - ref)) < 1e-3

    print("KERNEL_OK")
</pallas_src>

<mosaic_0001>
module attributes {stable_mosaic.version = 11 : i64} {
  func.func @_speaker_embed_kernel(%arg0: i32, %arg1: memref<2x16x128xbf16, #tpu.memory_space<vmem>>, %arg2: memref<128x128xbf16, #tpu.memory_space<vmem>>, %arg3: memref<1x128xf32, #tpu.memory_space<vmem>>, %arg4: memref<128x128xbf16, #tpu.memory_space<vmem>>, %arg5: memref<1x128xf32, #tpu.memory_space<vmem>>, %arg6: memref<2x128xf32, #tpu.memory_space<vmem>>) attributes {dimension_semantics = [#tpu.dimension_semantics<parallel>], iteration_bounds = array<i64: 1>, scalar_prefetch = 0 : i64, scratch_operands = 0 : i64, tpu.core_type = #tpu.core_type<tc>, window_params = [{transform_indices = @transform_0, window_bounds = array<i64: 2, 16, 128>}, {pipeline_mode = #tpu.pipeline_mode<synchronous>, transform_indices = @transform_1, window_bounds = array<i64: 128, 128>}, {pipeline_mode = #tpu.pipeline_mode<synchronous>, transform_indices = @transform_2, window_bounds = array<i64: 1, 128>}, {pipeline_mode = #tpu.pipeline_mode<synchronous>, transform_indices = @transform_3, window_bounds = array<i64: 128, 128>}, {pipeline_mode = #tpu.pipeline_mode<synchronous>, transform_indices = @transform_4, window_bounds = array<i64: 1, 128>}, {transform_indices = @transform_5, window_bounds = array<i64: 2, 128>}]} {
    %c0 = arith.constant 0 : index
    %c0_0 = arith.constant 0 : index
    %c0_1 = arith.constant 0 : index
    %0 = vector.load %arg1[%c0, %c0_0, %c0_1] : memref<2x16x128xbf16, #tpu.memory_space<vmem>>, vector<2x16x128xbf16>
    %1 = vector.shape_cast %0 : vector<2x16x128xbf16> to vector<32x128xbf16>
    %c0_2 = arith.constant 0 : index
    %c0_3 = arith.constant 0 : index
    %2 = vector.load %arg2[%c0_2, %c0_3] : memref<128x128xbf16, #tpu.memory_space<vmem>>, vector<128x128xbf16>
    %cst = arith.constant dense<0.000000e+00> : vector<32x128xf32>
    %3 = tpu.matmul %1, %2, %cst {dimension_numbers = #tpu.dot_dimension_numbers<[1], [0], [0], [1], [0, 0, 1, 1], [], []>} : vector<32x128xbf16>, vector<128x128xbf16>, vector<32x128xf32> -> vector<32x128xf32>
    %c0_4 = arith.constant 0 : index
    %c0_5 = arith.constant 0 : index
    %4 = vector.load %arg3[%c0_4, %c0_5] : memref<1x128xf32, #tpu.memory_space<vmem>>, vector<1x128xf32>
    %5 = vector.broadcast %4 : vector<1x128xf32> to vector<32x128xf32>
    %6 = arith.addf %3, %5 : vector<32x128xf32>
    %cst_6 = arith.constant 0.000000e+00 : f32
    %7 = vector.broadcast %cst_6 : f32 to vector<32x128xf32>
    %8 = arith.maximumf %6, %7 : vector<32x128xf32>
    %9 = vector.shape_cast %8 : vector<32x128xf32> to vector<2x16x128xf32>
    %cst_7 = arith.constant dense<0.000000e+00> : vector<2x128xf32>
    %10 = vector.multi_reduction <add>, %9, %cst_7 [1] : vector<2x16x128xf32> to vector<2x128xf32>
    %cst_8 = arith.constant 1.600000e+01 : f32
    %11 = vector.broadcast %cst_8 : f32 to vector<2x128xf32>
    %12 = arith.divf %10, %11 : vector<2x128xf32>
    %13 = arith.truncf %12 : vector<2x128xf32> to vector<2x128xbf16>
    %c0_9 = arith.constant 0 : index
    %c0_10 = arith.constant 0 : index
    %14 = vector.load %arg4[%c0_9, %c0_10] : memref<128x128xbf16, #tpu.memory_space<vmem>>, vector<128x128xbf16>
    %cst_11 = arith.constant dense<0.000000e+00> : vector<2x128xf32>
    %15 = tpu.matmul %13, %14, %cst_11 {dimension_numbers = #tpu.dot_dimension_numbers<[1], [0], [0], [1], [0, 0, 1, 1], [], []>} : vector<2x128xbf16>, vector<128x128xbf16>, vector<2x128xf32> -> vector<2x128xf32>
    %c0_12 = arith.constant 0 : index
    %c0_13 = arith.constant 0 : index
    %16 = vector.load %arg5[%c0_12, %c0_13] : memref<1x128xf32, #tpu.memory_space<vmem>>, vector<1x128xf32>
    %17 = vector.broadcast %16 : vector<1x128xf32> to vector<2x128xf32>
    %18 = arith.addf %15, %17 : vector<2x128xf32>
    %c0_14 = arith.constant 0 : index
    %c0_15 = arith.constant 0 : index
    %19 = vector.load %arg6[%c0_14, %c0_15] : memref<2x128xf32, #tpu.memory_space<vmem>>, vector<2x128xf32>
    tpu.vector_store %arg6[%c0_14, %c0_15], %18 {strides = array<i32>} : memref<2x128xf32, #tpu.memory_space<vmem>>, vector<2x128xf32>,
    return
  }
  func.func @transform_0(%arg0: i32) -> (i32, i32, i32) {
    %c0_i32 = arith.constant 0 : i32
    %c0_i32_0 = arith.constant 0 : i32
    %c0_i32_1 = arith.constant 0 : i32
    return %arg0, %c0_i32, %c0_i32_0 : i32, i32, i32
  }
  func.func @transform_1(%arg0: i32) -> (i32, i32) {
    %c0_i32 = arith.constant 0 : i32
    %c0_i32_0 = arith.constant 0 : i32
    %c0_i32_1 = arith.constant 0 : i32
    return %c0_i32, %c0_i32_0 : i32, i32
  }
  func.func @transform_2(%arg0: i32) -> (i32, i32) {
    %c0_i32 = arith.constant 0 : i32
    %c0_i32_0 = arith.constant 0 : i32
    %c0_i32_1 = arith.constant 0 : i32
    return %c0_i32, %c0_i32_0 : i32, i32
  }
  func.func @transform_3(%arg0: i32) -> (i32, i32) {
    %c0_i32 = arith.constant 0 : i32
    %c0_i32_0 = arith.constant 0 : i32
    %c0_i32_1 = arith.constant 0 : i32
    return %c0_i32, %c0_i32_0 : i32, i32
  }
  func.func @transform_4(%arg0: i32) -> (i32, i32) {
    %c0_i32 = arith.constant 0 : i32
    %c0_i32_0 = arith.constant 0 : i32
    %c0_i32_1 = arith.constant 0 : i32
    return %c0_i32, %c0_i32_0 : i32, i32
  }
  func.func @transform_5(%arg0: i32) -> (i32, i32) {
    %c0_i32 = arith.constant 0 : i32
    %c0_i32_0 = arith.constant 0 : i32
    return %arg0, %c0_i32 : i32, i32
  }
}

</mosaic_0001>

<bundles_post_ra>
// kernel: tpu_custom_call.1
= control target key start
LH: loop header
LB: loop body
LE: loop exit
PB: predicated region body
PF: predicated region fallthrough
CT: control target
= control target key end

     0   :  { %10 = vsyncpa [#allocation3], 0  ;;  %s665_s0 = inlined_call_operand.hbm [shape: bf16[2,16,128], index: 0, kind: input, shape index: {}]   ;;  %s666_s1 = inlined_call_operand.hbm [shape: bf16[128,128], index: 1, kind: input, shape index: {}]   ;;  %s667_s2 = inlined_call_operand.vmem [shape: f32[1,128], index: 2, kind: input, shape index: {}]   ;;  %s668_s3 = inlined_call_operand.hbm [shape: bf16[128,128], index: 3, kind: input, shape index: {}]   ;;  %s669_s4 = inlined_call_operand.vmem [shape: f32[1,128], index: 4, kind: input, shape index: {}]   ;;  %s670_s5 = inlined_call_operand.hbm [shape: f32[2,128], index: 5, kind: output, shape index: {}]  }
   0x1   :  { %11 = vsyncpa [#allocation6], 0 }
   0x2   :  { %12 = vsyncpa [#allocation4], 0  ;;  %s557_s18 = smov [#allocation5]   ;;  %s558_s20 = smov [#allocation2]  }
   0x3   :  { %s30_s19 = sshll.u32 %s557_s18, 4  ;;  %s18_s21 = sshll.u32 %s558_s20, 4  ;;  %s31_s19 = int_to_ptr.vmem [resolvable:$true] %s30_s19  ;;  %s595_s21 = int_to_ptr.vmem [resolvable:$true] %s18_s21 }
   0x4   :  { %s463_s24 = scalar_lea.hbm %s666_s1, 1024 }
   0x5   :  { %p464_p0 = scmp.ne.s32.totalorder %s666_s1, %s463_s24  ;;  %p467_p1 = scmp.lt.u32.totalorder %s463_s24, %s666_s1 }
   0x7   :  { %p469_p2 = pnand %p467_p1, %p464_p0 }
   0x9   :  { %472 = shalt.err (!%p469_p2)
}
   0xa   :  { %s473_s29 = scalar_lea.vmem %s31_s19, 1024  ;;  %p478_p4 = scmp.lt.s32.totalorder %s31_s19, %s31_s19 }
   0xb   :  { %p474_p3 = scmp.ne.s32.totalorder %s31_s19, %s473_s29  ;;  %p479_p5 = scmp.lt.s32.totalorder %s473_s29, %s473_s29 }
   0xd   :  { %p480_p6 = por %p479_p5, %p478_p4 }
   0xf   :  { %p481_p7 = pnand %p480_p6, %p474_p3 }
  0x11   :  { %484 = shalt.err (!%p481_p7)
}
  0x12   :  { %s559_s30 = smov 64   ;;  %s560_s6 = smov 4  }
  0x13   :  { %36 = dma.hbm_to_vmem [thread:$0]  %s666_s1, 1024, %s31_s19, [#allocation6], %s559_s30, %s559_s30, %s560_s6  }
  0x14   :  { %s485_s11 = scalar_lea.hbm %s665_s0, 256 }
  0x15   :  { %p486_p8 = scmp.ne.s32.totalorder %s665_s0, %s485_s11  ;;  %p489_p9 = scmp.lt.u32.totalorder %s485_s11, %s665_s0 }
  0x17   :  { %p491_p10 = pnand %p489_p9, %p486_p8 }
  0x19   :  { %494 = shalt.err (!%p491_p10)
}
  0x1a   :  { %s495_s16 = scalar_lea.vmem %s595_s21, 256  ;;  %p500_p12 = scmp.lt.s32.totalorder %s595_s21, %s595_s21 }
  0x1b   :  { %p496_p11 = scmp.ne.s32.totalorder %s595_s21, %s495_s16  ;;  %p501_p13 = scmp.lt.s32.totalorder %s495_s16, %s495_s16 }
  0x1d   :  { %p502_p0 = por %p501_p13, %p500_p12 }
  0x1f   :  { %p503_p1 = pnand %p502_p0, %p496_p11 }
  0x21   :  { %506 = shalt.err (!%p503_p1)
}
  0x22   :  { %24 = dma.hbm_to_vmem [thread:$0]  %s665_s0, 256, %s595_s21, [#allocation3], %s559_s30, %s559_s30, %s560_s6  }
  0x23   :  { %s561_s18 = smov [#allocation7]   ;;  %s507_s23 = scalar_lea.hbm %s668_s3, 1024 }
  0x24   :  { %s44_s19 = sshll.u32 %s561_s18, 4  ;;  %p508_p2 = scmp.ne.s32.totalorder %s668_s3, %s507_s23  ;;  %s45_s19 = int_to_ptr.vmem [resolvable:$true] %s44_s19 }
  0x25   :  { %p511_p3 = scmp.lt.u32.totalorder %s507_s23, %s668_s3 }
  0x27   :  { %p513_p4 = pnand %p511_p3, %p508_p2 }
  0x29   :  { %516 = shalt.err (!%p513_p4)
}
  0x2a   :  { %s517_s28 = scalar_lea.vmem %s45_s19, 1024  ;;  %p522_p6 = scmp.lt.s32.totalorder %s45_s19, %s45_s19 }
  0x2b   :  { %p518_p5 = scmp.ne.s32.totalorder %s45_s19, %s517_s28  ;;  %p523_p7 = scmp.lt.s32.totalorder %s517_s28, %s517_s28 }
  0x2d   :  { %p524_p8 = por %p523_p7, %p522_p6 }
  0x2f   :  { %p525_p9 = pnand %p524_p8, %p518_p5 }
  0x31   :  { %528 = shalt.err (!%p525_p9)
}
  0x32   :  { %50 = dma.hbm_to_vmem [thread:$0]  %s668_s3, 1024, %s45_s19, [#allocation6], %s559_s30, %s559_s30, %s560_s6  }
  0x33   :  { %551 = dma.done.wait [#allocation3], 256  }
  0x34   :  { %552 = vsyncadd [#allocation3], 4294967040 }
  0x35   :  { %553 = dma.done.wait [#allocation6], 2048  }
  0x36   :  { %554 = vsyncadd [#allocation6], 4294965248  ;;  %v562_v0 = vmov 0.0   ;;  %v445_v1 = vld [vmem:[#allocation5] sm:$0xff]   ;;  %v446_v2 = vld [vmem:[#allocation5 + $0x8] sm:$0xff]   ;;  %vm563_vm0 = vmmov 0  }
  0x37   :  { %417 = vmatprep.subr.bf16.mxu1 %v562_v0  ;;  %397 = vmatprep.subr.bf16.mxu0 %v445_v1  ;;  %v447_v3 = vld [vmem:[#allocation5 + $0x10] sm:$0xff]   ;;  %v448_v4 = vld [vmem:[#allocation5 + $0x18] sm:$0xff]   ;;  %v449_v6 = vld [vmem:[#allocation5 + $0x20] sm:$0xff]   ;;  %vm249_vm1 = vcmask 1041409   ;;  %s564_s6 = smov [#allocation8]  }
  0x38   :  { %398 = vmatpush3.bf16.msra.mxu0 %v445_v1  ;;  %v453_v5 = vld [vmem:[#allocation2] sm:$0xff]   ;;  %v450_v7 = vld [vmem:[#allocation5 + $0x28] sm:$0xff]   ;;  %v452_v9 = vld [vmem:[#allocation5 + $0x38] sm:$0xff]   ;;  %433 = vmatprep.mubr.msk.bf16.mxu1 %vm563_vm0, %v562_v0  ;;  %s348_s7 = sshll.u32 %s564_s6, 4  ;;  %s349_s7 = int_to_ptr.vmem [resolvable:$true] %s348_s7 }
  0x39   :  { %399 = vmatprep.subr.bf16.mxu0 %v446_v2  ;;  %413 = vmatprep.mubr.bf16.mxu0 %v453_v5  ;;  %v451_v8 = vld [vmem:[#allocation5 + $0x30] sm:$0xff]   ;;  %v454_v10 = vld [vmem:[#allocation2 + $0x8] sm:$0xff]   ;;  %v455_v11 = vld [vmem:[#allocation7] sm:$0xff]   ;;  %s529_s8 = scalar_lea.vmem %s349_s7, 32  ;;  %p534_p11 = scmp.lt.s32.totalorder %s349_s7, %s349_s7 }
  0x3a   :  { %418 = vmatpush3.bf16.msra.mxu1 %v455_v11  ;;  %v456_v12 = vld [vmem:[#allocation7 + $0x8] sm:$0xff]   ;;  %v457_v13 = vld [vmem:[#allocation7 + $0x10] sm:$0xff]   ;;  %v458_v14 = vld [vmem:[#allocation7 + $0x18] sm:$0xff]   ;;  %p530_p10 = scmp.ne.s32.totalorder %s349_s7, %s529_s8  ;;  %p535_p12 = scmp.lt.s32.totalorder %s529_s8, %s529_s8 }
  0x3b   :  { %419 = vmatprep.subr.bf16.mxu1 %v562_v0  ;;  %v459_v15 = vld [vmem:[#allocation7 + $0x20] sm:$0xff]   ;;  %v460_v16 = vld [vmem:[#allocation7 + $0x28] sm:$0xff]   ;;  %v461_v17 = vld [vmem:[#allocation7 + $0x30] sm:$0xff]  }
  0x3c   :  { %400 = vmatpush3.bf16.msra.mxu0 %v446_v2  ;;  %v462_v18 = vld [vmem:[#allocation7 + $0x38] sm:$0xff]   ;;  %v358_v19 = vld [vmem:[%s667_s2] ss:$0 sm:$0xff]  ;;  %p536_p13 = por %p535_p12, %p534_p11 }
  0x3d   :  { %401 = vmatprep.subr.bf16.mxu0 %v447_v3  ;;  %v369_v54 = vld [vmem:[%s669_s4] ss:$0 sm:$0xff] }
  0x3e   :  { %420 = vmatpush3.bf16.msra.mxu1 %v456_v12  ;;  %p537_p0 = pnand %p536_p13, %p530_p10 }
  0x3f   :  { %421 = vmatprep.subr.bf16.mxu1 %v562_v0 }
  0x40   :  { %402 = vmatpush3.bf16.msra.mxu0 %v447_v3 }
  0x41   :  { %403 = vmatprep.subr.bf16.mxu0 %v448_v4 }
  0x42   :  { %422 = vmatpush3.bf16.msra.mxu1 %v457_v13 }
  0x43   :  { %423 = vmatprep.subr.bf16.mxu1 %v562_v0 }
  0x44   :  { %404 = vmatpush3.bf16.msra.mxu0 %v448_v4 }
  0x45   :  { %405 = vmatprep.subr.bf16.mxu0 %v449_v6 }
  0x46   :  { %424 = vmatpush3.bf16.msra.mxu1 %v458_v14 }
  0x47   :  { %425 = vmatprep.subr.bf16.mxu1 %v562_v0 }
  0x48   :  { %406 = vmatpush3.bf16.msra.mxu0 %v449_v6 }
  0x49   :  { %407 = vmatprep.subr.bf16.mxu0 %v450_v7 }
  0x4a   :  { %426 = vmatpush3.bf16.msra.mxu1 %v459_v15 }
  0x4b   :  { %427 = vmatprep.subr.bf16.mxu1 %v562_v0 }
  0x4c   :  { %408 = vmatpush3.bf16.msra.mxu0 %v450_v7 }
  0x4d   :  { %409 = vmatprep.subr.bf16.mxu0 %v451_v8 }
  0x4e   :  { %428 = vmatpush3.bf16.msra.mxu1 %v460_v16 }
  0x4f   :  { %429 = vmatprep.subr.bf16.mxu1 %v562_v0 }
  0x50   :  { %410 = vmatpush3.bf16.msra.mxu0 %v451_v8 }
  0x51   :  { %411 = vmatprep.subr.bf16.mxu0 %v452_v9 }
  0x52   :  { %430 = vmatpush3.bf16.msra.mxu1 %v461_v17 }
  0x53   :  { %431 = vmatprep.subr.bf16.mxu1 %v562_v0 }
  0x54   :  { %412 = vmatpush3.bf16.msra.mxu0 %v452_v9 }
  0x56   :  { %432 = vmatpush3.bf16.msra.mxu1 %v462_v18 }
  0x57   :  { %414 = vmatmul.mubr.bf16.vlgmr.msra.gmra.mrb[0].mxu0 %v454_v10 }
 0x12a   :  { %v415_v20 = vpop.f32.mrb[0].mxu0 }
 0x12b   :  { %v193_v21 = vadd.f32 %v415_v20, %v358_v19  ;;  %v184_v22 = vpop.f32.mrb[1].mxu0 }
 0x12c   :  { %v185_v23 = vadd.f32 %v358_v19, %v184_v22  ;;  %v416_v24 = vpop.f32.mrb[2].mxu0 }
 0x12d   :  { %v196_v25 = vadd.f32 %v416_v24, %v358_v19  ;;  %v187_v26 = vpop.f32.mrb[3].mxu0  ;;  %v201_v28 = vmax.f32 %v193_v21, 0.0 }
 0x12e   :  { %v188_v27 = vadd.f32 %v358_v19, %v187_v26  ;;  %v199_v30 = vmax.f32 %v185_v23, 0.0 }
 0x12f   :  { %v202_v29 = vmax.f32 %v196_v25, 0.0 }
 0x130   :  { %v200_v31 = vmax.f32 %v188_v27, 0.0 }
 0x131   :  { %v210_v32 = vadd.f32 %v202_v29, %v201_v28 }
 0x132   :  { %v203_v33 = vadd.f32 %v200_v31, %v199_v30 }
 0x133   :  { %v211_v34 = vrot.slane %v210_v32, 4 }
 0x134   :  { %v204_v35 = vrot.slane %v203_v33, 4 }
 0x135   :  { %v212_v36 = vadd.f32 %v211_v34, %v210_v32 }
 0x136   :  { %v205_v37 = vadd.f32 %v204_v35, %v203_v33 }
 0x137   :  { %v213_v38 = vrot.slane %v212_v36, 2 }
 0x138   :  { %v206_v39 = vrot.slane %v205_v37, 2 }
 0x139   :  { %v214_v40 = vadd.f32 %v213_v38, %v212_v36 }
 0x13a   :  { %v207_v41 = vadd.f32 %v206_v39, %v205_v37 }
 0x13b   :  { %v215_v42 = vrot.slane %v214_v40, 1 }
 0x13c   :  { %v208_v43 = vrot.slane %v207_v41, 1 }
 0x13d   :  { %v216_v44 = vadd.f32 %v215_v42, %v214_v40 }
 0x13e   :  { %v209_v45 = vadd.f32 %v208_v43, %v207_v41 }
 0x13f   :  { %v219_v46 = vmul.f32 0.0625, %v216_v44 }
 0x140   :  { %v218_v47 = vmul.f32 0.0625, %v209_v45 }
 0x141   :  { %v221_v48 = vpack.c.bf16 %v219_v46, %v219_v46 }
 0x142   :  { %v220_v49 = vpack.c.bf16 %v218_v47, %v218_v47 }
 0x143   :  { %v248_v50 = vunpack.c.l.b16 %v221_v48 }
 0x144   :  { %v247_v51 = vunpack.c.l.b16 %v220_v49 }
 0x146   :  { %v250_v52 = vsel %vm249_vm1, %v248_v50, %v247_v51 }
 0x147   :  { %v251_v53 = vpack.c.b16 %v250_v52, %v250_v52 }
 0x149   :  { %434 = vmatmul.mubr.bf16.vlgmr.msra.gmra.mrb[0].mxu1 %v251_v53 }
 0x21c   :  { %v335_v55 = vpop.f32.mrb[0].mxu1 }
 0x21d   :  { %v336_v56 = vadd.f32 %v369_v54, %v335_v55  ;;  %v435_v57 = vpop.f32.mrb[1].mxu1 }
 0x21e   :  { %v338_v58 = vpop.f32.mrb[2].mxu1 }
 0x21f   :  { %341 = vst [vmem:[#allocation8] sm:$0x3] %v336_v56  ;;  %v436_v59 = vpop.f32.mrb[3].mxu1 }
 0x220   :  { %540 = shalt.err (!%p537_p0)
}
 0x221   :  { %s541_s4 = scalar_lea.hbm %s670_s5, 32 }
 0x222   :  { %p542_p1 = scmp.ne.s32.totalorder %s670_s5, %s541_s4  ;;  %p545_p2 = scmp.lt.u32.totalorder %s541_s4, %s670_s5 }
 0x224   :  { %p547_p3 = pnand %p545_p2, %p542_p1 }
 0x226   :  { %550 = shalt.err (!%p547_p3)
}
 0x227   :  { %351 = dma.vmem_to_hbm [thread:$0]  %s349_s7, 32, %s670_s5, [#allocation4]  }
 0x228   :  { %555 = dma.done.wait [#allocation4], 32  }
 0x229   :  { %556 = vsyncadd [#allocation4], 4294967264 }
 0x22a   :  { %355 = vsyncpa [#allocation3], 1 }
 0x22b   :  { %356 = vsyncpa [#allocation6], 1 }
 0x22c   :  { %357 = vsyncpa [#allocation4], 1 }

</bundles_post_ra>
